<compile_context>
chip_gen: v5e
topology: v5e:2x2
jax: 0.10.0
libtpu: 0.0.40
codegen_flags: <defaults>
</compile_context>

<pallas_src>
import functools

import jax
import jax.numpy as jnp
from jax.experimental import pallas as pl
from jax.experimental.pallas import tpu as pltpu


def _round_up(x: int, m: int) -> int:
    return ((x + m - 1) // m) * m


def _pinball_kernel(q_ref, yp_ref, yt_ref, out_ref, acc_ref, *, inv_count):
    # q_ref  : (Q, 1)  quantiles (resident across the grid)
    # yp_ref : (Q, TB) prediction tile, batch on the lane axis
    # yt_ref : (1, TB) target tile, sublane-broadcast against Q
    # out_ref: (1, 1)  SMEM scalar output
    # acc_ref: (Q, TB) f32 VMEM accumulator, persists across grid steps
    i = pl.program_id(0)

    @pl.when(i == 0)
    def _init():
        acc_ref[...] = jnp.zeros_like(acc_ref)

    q = q_ref[...].astype(jnp.float32)          # (Q, 1)
    y_pred = yp_ref[...].astype(jnp.float32)    # (Q, TB) in-kernel cast
    y_true = yt_ref[...].astype(jnp.float32)    # (1, TB)

    diff = y_pred - y_true                      # (Q, TB)
    # One select + one multiply; (1 - q) / (-q) are tiny per-block (Q, 1) columns.
    weight = jnp.where(diff >= 0.0, 1.0 - q, -q)
    acc_ref[...] += diff * weight

    @pl.when(i == pl.num_programs(0) - 1)
    def _finalize():
        out_ref[0, 0] = jnp.sum(acc_ref[...]) * inv_count


def pinball_loss(y_pred, y_true, quantiles, *, lane_tile_max=128 * 1024):
    """Pinball (quantile) loss.

    y_pred: (B, Q), y_true: (B, 1), quantiles: (1, Q). Returns a f32 scalar.
    Inputs are passed to the kernel in their native dtype (no wrapper upcast).
    """
    B, Q = y_pred.shape
    assert quantiles.shape == (1, Q)
    assert y_true.shape == (B, 1)

    # Lane-dense layout: batch rides the 128-lane axis (layout plumbing only).
    yp_t = y_pred.T                  # (Q, B)
    yt_t = y_true.reshape(1, B)      # (1, B)
    q_t = quantiles.reshape(Q, 1)    # (Q, 1)

    # Lane tile: multiple of 128, capped so each double-buffered block stays a
    # few MiB at most (safe for v7x VMEM as well as v5e/v6e scoped defaults).
    b_lane = _round_up(B, 128)
    tb = min(b_lane, lane_tile_max)
    b_pad = _round_up(B, tb)
    if b_pad != B:
        pad = b_pad - B
        # Zero-padded columns give diff == 0 -> pb == 0 -> no effect on the sum.
        yp_t = jnp.pad(yp_t, ((0, 0), (0, pad)))
        yt_t = jnp.pad(yt_t, ((0, 0), (0, pad)))
    num_tiles = b_pad // tb

    inv_count = 1.0 / float(B * Q)   # mean over the TRUE element count
    kernel = functools.partial(_pinball_kernel, inv_count=inv_count)

    out = pl.pallas_call(
        kernel,
        out_shape=jax.ShapeDtypeStruct((1, 1), jnp.float32),
        grid_spec=pltpu.PrefetchScalarGridSpec(
            num_scalar_prefetch=0,
            grid=(num_tiles,),
            in_specs=[
                pl.BlockSpec((Q, 1), lambda i: (0, 0)),    # quantiles (resident)
                pl.BlockSpec((Q, tb), lambda i: (0, i)),   # y_pred tile
                pl.BlockSpec((1, tb), lambda i: (0, i)),   # y_true tile
            ],
            out_specs=pl.BlockSpec(memory_space=pltpu.MemorySpace.SMEM),
            scratch_shapes=[pltpu.VMEM((Q, tb), jnp.float32)],
        ),
        compiler_params=pltpu.CompilerParams(
            # Single grid axis is a reduction axis (persistent accumulator).
            dimension_semantics=("arbitrary",),
        ),
    )(q_t, yp_t, yt_t)
    return out[0, 0]


if __name__ == "__main__":
    # Deterministic "module init": quantiles as in PinballLoss.__init__
    quantile_values = [0.1, 0.5, 0.9, 0.95]
    quantiles = jnp.asarray(quantile_values, dtype=jnp.float32).reshape(1, -1)
    Q = quantiles.shape[1]

    def reference(y_pred, y_true):
        diff = y_pred - y_true
        return jnp.mean(
            jnp.where(diff >= 0, (1.0 - quantiles) * diff, quantiles * (-diff)))

    key = jax.random.PRNGKey(0)
    k1, k2, k3, k4 = jax.random.split(key, 4)

    # Case 1: small batch, single tile.
    B = 8
    y_pred = jax.random.normal(k1, (B, Q), dtype=jnp.float32)
    y_true = jax.random.normal(k2, (B, 1), dtype=jnp.float32)
    loss = jax.block_until_ready(pinball_loss(y_pred, y_true, quantiles))
    ref = reference(y_pred, y_true)
    assert jnp.allclose(loss, ref, rtol=1e-5, atol=1e-6), (loss, ref)

    # Case 2: batch not a multiple of the tile + forced multi-tile grid
    # (exercises zero-pad tail handling and the cross-tile accumulator).
    B2 = 300
    y_pred2 = jax.random.normal(k3, (B2, Q), dtype=jnp.float32)
    y_true2 = jax.random.normal(k4, (B2, 1), dtype=jnp.float32)
    loss2 = jax.block_until_ready(
        pinball_loss(y_pred2, y_true2, quantiles, lane_tile_max=128))
    ref2 = reference(y_pred2, y_true2)
    assert jnp.allclose(loss2, ref2, rtol=1e-5, atol=1e-6), (loss2, ref2)

    print("KERNEL_OK")
</pallas_src>

<mosaic_0001>
module attributes {stable_mosaic.version = 11 : i64} {
  func.func @_pinball_kernel(%arg0: i32, %arg1: memref<4x1xf32, #tpu.memory_space<vmem>>, %arg2: memref<4x128xf32, #tpu.memory_space<vmem>>, %arg3: memref<1x128xf32, #tpu.memory_space<vmem>>, %arg4: memref<1x1xf32, #tpu.memory_space<smem>>, %arg5: memref<4x128xf32, #tpu.memory_space<vmem>>) attributes {dimension_semantics = [#tpu.dimension_semantics<arbitrary>], iteration_bounds = array<i64: 1>, scalar_prefetch = 0 : i64, scratch_operands = 1 : i64, tpu.core_type = #tpu.core_type<tc>, window_params = [{pipeline_mode = #tpu.pipeline_mode<synchronous>, transform_indices = @transform_0, window_bounds = array<i64: 4, 1>}, {transform_indices = @transform_1, window_bounds = array<i64: 4, 128>}, {transform_indices = @transform_2, window_bounds = array<i64: 1, 128>}, {transform_indices = @transform_3, window_bounds = array<i64: 1, 1>}]} {
    %c0_i32 = arith.constant 0 : i32
    %0 = arith.cmpi eq, %arg0, %c0_i32 : i32
    %1 = arith.extui %0 : i1 to i32
    %c0_i32_0 = arith.constant 0 : i32
    %2 = arith.cmpi ne, %1, %c0_i32_0 : i32
    scf.if %2 {
      %cst_14 = arith.constant 0.000000e+00 : f32
      %26 = vector.broadcast %cst_14 : f32 to vector<4x128xf32>
      %c0_15 = arith.constant 0 : index
      %c0_16 = arith.constant 0 : index
      %27 = vector.load %arg5[%c0_15, %c0_16] : memref<4x128xf32, #tpu.memory_space<vmem>>, vector<4x128xf32>
      tpu.vector_store %arg5[%c0_15, %c0_16], %26 {strides = array<i32>} : memref<4x128xf32, #tpu.memory_space<vmem>>, vector<4x128xf32>,
    } else {
    }
    %c0 = arith.constant 0 : index
    %c0_1 = arith.constant 0 : index
    %3 = vector.load %arg1[%c0, %c0_1] : memref<4x1xf32, #tpu.memory_space<vmem>>, vector<4x1xf32>
    %c0_2 = arith.constant 0 : index
    %c0_3 = arith.constant 0 : index
    %4 = vector.load %arg2[%c0_2, %c0_3] : memref<4x128xf32, #tpu.memory_space<vmem>>, vector<4x128xf32>
    %c0_4 = arith.constant 0 : index
    %c0_5 = arith.constant 0 : index
    %5 = vector.load %arg3[%c0_4, %c0_5] : memref<1x128xf32, #tpu.memory_space<vmem>>, vector<1x128xf32>
    %6 = vector.broadcast %5 : vector<1x128xf32> to vector<4x128xf32>
    %7 = arith.subf %4, %6 : vector<4x128xf32>
    %cst = arith.constant 0.000000e+00 : f32
    %8 = vector.broadcast %cst : f32 to vector<4x128xf32>
    %9 = arith.cmpf oge, %7, %8 : vector<4x128xf32>
    %cst_6 = arith.constant 1.000000e+00 : f32
    %10 = vector.broadcast %cst_6 : f32 to vector<4x1xf32>
    %11 = arith.subf %10, %3 : vector<4x1xf32>
    %cst_7 = arith.constant 0.000000e+00 : f32
    %12 = vector.broadcast %cst_7 : f32 to vector<4x1xf32>
    %13 = arith.subf %12, %3 : vector<4x1xf32>
    %14 = vector.shape_cast %11 : vector<4x1xf32> to vector<4x1xf32>
    %15 = vector.broadcast %14 : vector<4x1xf32> to vector<4x128xf32>
    %16 = vector.shape_cast %13 : vector<4x1xf32> to vector<4x1xf32>
    %17 = vector.broadcast %16 : vector<4x1xf32> to vector<4x128xf32>
    %18 = arith.select %9, %15, %17 : vector<4x128xi1>, vector<4x128xf32>
    %c0_8 = arith.constant 0 : index
    %c0_9 = arith.constant 0 : index
    %19 = vector.load %arg5[%c0_8, %c0_9] : memref<4x128xf32, #tpu.memory_space<vmem>>, vector<4x128xf32>
    %20 = arith.mulf %7, %18 : vector<4x128xf32>
    %21 = arith.addf %19, %20 : vector<4x128xf32>
    %c0_10 = arith.constant 0 : index
    %c0_11 = arith.constant 0 : index
    %22 = vector.load %arg5[%c0_10, %c0_11] : memref<4x128xf32, #tpu.memory_space<vmem>>, vector<4x128xf32>
    tpu.vector_store %arg5[%c0_10, %c0_11], %21 {strides = array<i32>} : memref<4x128xf32, #tpu.memory_space<vmem>>, vector<4x128xf32>,
    %c0_i32_12 = arith.constant 0 : i32
    %23 = arith.cmpi eq, %arg0, %c0_i32_12 : i32
    %24 = arith.extui %23 : i1 to i32
    %c0_i32_13 = arith.constant 0 : i32
    %25 = arith.cmpi ne, %24, %c0_i32_13 : i32
    scf.if %25 {
      %c0_14 = arith.constant 0 : index
      %c0_15 = arith.constant 0 : index
      %26 = vector.load %arg5[%c0_14, %c0_15] : memref<4x128xf32, #tpu.memory_space<vmem>>, vector<4x128xf32>
      %27 = vector.shape_cast %26 : vector<4x128xf32> to vector<1x4x128xf32>
      %cst_16 = arith.constant dense<0.000000e+00> : vector<1xf32>
      %28 = vector.multi_reduction <add>, %27, %cst_16 [1, 2] : vector<1x4x128xf32> to vector<1xf32>
      %29 = vector.shape_cast %28 : vector<1xf32> to vector<1x1x1xf32>
      %30 = vector.extract %29[0, 0, 0] : f32 from vector<1x1x1xf32>
      %cst_17 = arith.constant 3.125000e-02 : f32
      %31 = arith.mulf %30, %cst_17 : f32
      %c0_18 = arith.constant 0 : index
      %c0_19 = arith.constant 0 : index
      %32 = memref.load %arg4[%c0_18, %c0_19] : memref<1x1xf32, #tpu.memory_space<smem>>
      memref.store %31, %arg4[%c0_18, %c0_19] : memref<1x1xf32, #tpu.memory_space<smem>>
    } else {
    }
    return
  }
  func.func @transform_0(%arg0: i32) -> (i32, i32) {
    %c0_i32 = arith.constant 0 : i32
    %c0_i32_0 = arith.constant 0 : i32
    %c0_i32_1 = arith.constant 0 : i32
    return %c0_i32, %c0_i32_0 : i32, i32
  }
  func.func @transform_1(%arg0: i32) -> (i32, i32) {
    %c0_i32 = arith.constant 0 : i32
    %c0_i32_0 = arith.constant 0 : i32
    return %c0_i32, %arg0 : i32, i32
  }
  func.func @transform_2(%arg0: i32) -> (i32, i32) {
    %c0_i32 = arith.constant 0 : i32
    %c0_i32_0 = arith.constant 0 : i32
    return %c0_i32, %arg0 : i32, i32
  }
  func.func @transform_3(%arg0: i32) -> (i32, i32) {
    %c0_i32 = arith.constant 0 : i32
    %c0_i32_0 = arith.constant 0 : i32
    %c0_i32_1 = arith.constant 0 : i32
    return %c0_i32, %c0_i32_0 : i32, i32
  }
}

</mosaic_0001>

<bundles_post_ra>
// kernel: tpu_custom_call.1
= control target key start
LH: loop header
LB: loop body
LE: loop exit
PB: predicated region body
PF: predicated region fallthrough
CT: control target
= control target key end

     0   :  { %v99_v1 = vmov 0   ;;  %s134_s0 = inlined_call_operand.vmem [shape: f32[4,1], index: 0, kind: input, shape index: {}]   ;;  %s135_s1 = inlined_call_operand.vmem [shape: f32[4,128], index: 1, kind: input, shape index: {}]   ;;  %s136_s2 = inlined_call_operand.vmem [shape: f32[1,128], index: 2, kind: input, shape index: {}]   ;;  %s137_s3 = inlined_call_operand.hbm [shape: f32[1,1], index: 3, kind: output, shape index: {}]  }
   0x1   :  { %v20_v0 = vld [vmem:[%s134_s0] sm:$0xf]  ;;  %83 = vset.pattern.permute.xlu0 %v99_v1 }
   0x2   :  { %v28_v2 = vsub.f32 1.0, %v20_v0 }
   0x3   :  { %8 = vsyncpa [#allocation4], 0  ;;  %v29_v3 = vsub.f32 0.0, %v20_v0  ;;  %v100_v4 = vmov 0.0   ;;  %v84_v5 = vld [vmem:[%s136_s2] ss:$0 sm:$0xff] }
   0x4   :  { %32 = vperm.xlu0 %83, %v28_v2   ;;  %19 = vst [vmem:[#allocation2] sm:$0xf] %v100_v4  ;;  %v21_v6 = vld [vmem:[%s135_s1] sm:$0xf]  ;;  %vm49_vm1 = vcmask 1043456   ;;  %s68_s2 = sshll.u32 %s137_s3, 4  ;;  %s69_s2 = int_to_ptr.hbm [resolvable:$true] %s68_s2 }
   0x5   :  { %v26_v8 = vsub.f32 %v21_v6, %v84_v5  ;;  %s101_s20 = smov [#allocation3]  }
   0x7   :  { %vm27_vm0 = vcmp.ge.f32.partialorder %v26_v8, 0.0 }
   0xb   :  { %v41_v11 = vld [vmem:[#allocation2] sm:$0xf] }
   0xc   :  { %37 = vperm.xlu0 %83, %v29_v3  }
  0x76   :  { %v33_v7 = vpop.permute.xlu0 %32 }
  0x7e   :  { %v38_v9 = vpop.permute.xlu0 %37 }
  0x7f   :  { %v40_v10 = vsel %vm27_vm0, %v33_v7, %v38_v9 }
  0x80   :  { %v42_v12 = vmul.f32 %v40_v10, %v26_v8 }
  0x82   :  { %v43_v13 = vadd.f32 %v42_v12, %v41_v11 }
  0x84   :  { %44 = vst [vmem:[#allocation2] sm:$0xf] %v43_v13 }
  0x8b   :  { %v48_v14 = vld [vmem:[#allocation2] sm:$0xf] }
  0x8c   :  { %v50_v15 = vsel %vm49_vm1, %v48_v14, 0.0 }
  0x8d   :  { %51 = vadd.xlane.f32.xlu1 %v50_v15 }
 0x100   :  { %v52_v16 = vpop.xlane.xlu1 %51 }
 0x101   :  { %v53_v17 = vrot.slane %v52_v16, 4 }
 0x103   :  { %v54_v18 = vadd.f32 %v53_v17, %v52_v16 }
 0x105   :  { %v55_v19 = vrot.slane %v54_v18, 2 }
 0x107   :  { %v56_v20 = vadd.f32 %v55_v19, %v54_v18 }
 0x109   :  { %v57_v21 = vrot.slane %v56_v20, 1 }
 0x10b   :  { %v58_v22 = vadd.f32 %v57_v21, %v56_v20 }
 0x10d   :  { %78 = vpush %v58_v22 }
 0x13e   :  { %s79_s18 = spop %78 }
 0x13f   :  { %s60_s19 = smul.f32 0.03125, %s79_s18 }
 0x141   :  { %62 = sst [smem:[#allocation3]] %s60_s19 }
 0x142   :  { %71 = dma.smem_to_hbm %s101_s20, 16, %s69_s2, [#allocation4]  }
 0x143   :  { %97 = dma.done.wait [#allocation4], 16  }
 0x144   :  { %98 = vsyncadd [#allocation4], 4294967280 }
 0x145   :  { %76 = sfence }
 0x146   :  { %77 = vsyncpa [#allocation4], 1 }

</bundles_post_ra>
